<compile_context>
chip_gen: v7x
topology: tpu7x:2x2x1
jax: 0.10.0
libtpu: 0.0.40
codegen_flags: <defaults>
</compile_context>

<pallas_src>
import functools

import jax
import jax.numpy as jnp
from jax.experimental import pallas as pl
from jax.experimental.pallas import tpu as pltpu


def _round_up(x, m):
    return ((x + m - 1) // m) * m


# ---------------------------------------------------------------------------
# Pallas kernel:  O = relu?( sum_s A_s @ W_s + b )
# Multiple (A_s, W_s) "K segments" share one f32 VMEM accumulator; the K grid
# axis covers all segments back-to-back.
# ---------------------------------------------------------------------------
def _fused_matmul_kernel(*refs, seg_bounds, apply_relu):
    n_seg = len(seg_bounds)
    b_ref = refs[2 * n_seg]
    o_ref = refs[2 * n_seg + 1]
    acc_ref = refs[2 * n_seg + 2]
    k = pl.program_id(2)

    @pl.when(k == 0)
    def _init():
        acc_ref[...] = jnp.zeros_like(acc_ref)

    for s in range(n_seg):
        a_ref, w_ref = refs[2 * s], refs[2 * s + 1]
        lo, hi = seg_bounds[s]

        def _acc(a_ref=a_ref, w_ref=w_ref):
            acc_ref[...] += jnp.dot(a_ref[...], w_ref[...],
                                    preferred_element_type=jnp.float32)

        if n_seg == 1:
            _acc()
        else:
            pl.when(jnp.logical_and(k >= lo, k < hi))(_acc)

    @pl.when(k == pl.num_programs(2) - 1)
    def _epilogue():
        out = acc_ref[...] + b_ref[...]          # bias added exactly once
        if apply_relu:
            out = jnp.maximum(out, 0.0)
        o_ref[...] = out.astype(o_ref.dtype)


def _a_index_map(lo, kt):
    def imap(i, j, k):
        return (i, jnp.clip(k - lo, 0, kt - 1))
    return imap


def _w_index_map(lo, kt):
    def imap(i, j, k):
        return (jnp.clip(k - lo, 0, kt - 1), j)
    return imap


def fused_matmul_bias_act(segments, bias, *, apply_relu, out_dtype=jnp.float32):
    """segments: list of (A:(M,K_s), W:(K_s,Nout)) pairs sharing M and Nout."""
    M = segments[0][0].shape[0]
    Nout = int(bias.shape[-1])

    # ---- tile sizes ------------------------------------------------------
    tm = _round_up(M, 8) if M <= 256 else 256
    Mp = _round_up(M, tm)
    tn = 128                               # lane-dense output stores
    Np = _round_up(Nout, tn)

    inputs, in_specs, seg_bounds = [], [], []
    k_off = 0
    for a, w in segments:
        assert a.shape[0] == M
        Ks = a.shape[1]
        assert w.shape == (Ks, Nout), (w.shape, Ks, Nout)
        if Ks <= 512:                      # single full-K block (no K padding)
            tk, Kp, kt = Ks, Ks, 1
        else:                              # tile K, pad with zeros (no-op in dot)
            tk = 512
            Kp = _round_up(Ks, tk)
            kt = Kp // tk
        ap = jnp.pad(a, ((0, Mp - M), (0, Kp - Ks))).astype(jnp.bfloat16)
        wp = jnp.pad(w, ((0, Kp - Ks), (0, Np - Nout))).astype(jnp.bfloat16)
        lo, hi = k_off, k_off + kt
        seg_bounds.append((lo, hi))
        k_off = hi
        inputs += [ap, wp]
        in_specs += [pl.BlockSpec((tm, tk), _a_index_map(lo, kt)),
                     pl.BlockSpec((tk, tn), _w_index_map(lo, kt))]

    total_kt = k_off
    bias_p = jnp.pad(bias.reshape(1, Nout).astype(jnp.float32),
                     ((0, 0), (0, Np - Nout)))
    inputs.append(bias_p)
    in_specs.append(pl.BlockSpec((1, tn), lambda i, j, k: (0, j)))

    kernel = functools.partial(_fused_matmul_kernel,
                               seg_bounds=tuple(seg_bounds),
                               apply_relu=apply_relu)

    out = pl.pallas_call(
        kernel,
        out_shape=jax.ShapeDtypeStruct((Mp, Np), out_dtype),
        grid_spec=pltpu.PrefetchScalarGridSpec(
            num_scalar_prefetch=0,
            grid=(Mp // tm, Np // tn, total_kt),
            in_specs=in_specs,
            out_specs=pl.BlockSpec((tm, tn), lambda i, j, k: (i, j)),
            scratch_shapes=[pltpu.VMEM((tm, tn), jnp.float32)],
        ),
        compiler_params=pltpu.CompilerParams(
            dimension_semantics=("parallel", "parallel", "arbitrary"),
            vmem_limit_bytes=32 * 1024 * 1024,
        ),
    )(*inputs)
    return out[:M, :Nout]


# ---------------------------------------------------------------------------
# Glue: im2col for 3x3 conv with pad=1 (matches the PyTorch padding formula
# for both stride 1 and stride 2), and BN folding (running stats).
# ---------------------------------------------------------------------------
def im2col_3x3(x_nhwc, stride):
    N, H, W, C = x_nhwc.shape
    pad = 1
    xp = jnp.pad(x_nhwc, ((0, 0), (pad, pad), (pad, pad), (0, 0)))
    Ho = (H + 2 * pad - 3) // stride + 1
    Wo = (W + 2 * pad - 3) // stride + 1
    cols = []
    for i in range(3):
        for j in range(3):
            cols.append(
                xp[:, i:i + stride * (Ho - 1) + 1:stride,
                      j:j + stride * (Wo - 1) + 1:stride, :])
    patches = jnp.concatenate(cols, axis=-1)          # (N, Ho, Wo, 9*C)
    return patches.reshape(N * Ho * Wo, 9 * C), (N, Ho, Wo)


def fold_conv_bn(w_oihw, gamma, beta, mean, var, eps=1e-5):
    """Fold BatchNorm2d (eval mode) into the conv weight / a bias vector."""
    cout = w_oihw.shape[0]
    scale = gamma / jnp.sqrt(var + eps)               # (Cout,)
    # patch ordering is (ki, kj, cin); weight is (Cout, Cin, ki, kj)
    w2d = jnp.transpose(w_oihw, (2, 3, 1, 0)).reshape(-1, cout)
    return w2d * scale[None, :], beta - mean * scale


# ---------------------------------------------------------------------------
# DownConnection forward
# ---------------------------------------------------------------------------
def down_connection_forward(x_nchw, params, stride=2):
    # NCHW -> NHWC; bf16 activations feed the MXU (f32 accumulation).
    x = jnp.transpose(x_nchw, (0, 2, 3, 1)).astype(jnp.bfloat16)

    w1, b1 = fold_conv_bn(params["conv1_w"], *params["bn1"])
    w2, b2 = fold_conv_bn(params["conv2_w"], *params["bn2"])
    wd, bd = fold_conv_bn(params["down_w"], *params["bn_d"])

    # stage 1: y1 = relu(bn1(conv1(x)))          (3x3, stride 1, pad 1)
    a1, (N, H1, W1) = im2col_3x3(x, stride=1)
    y1 = fused_matmul_bias_act([(a1, w1)], b1, apply_relu=True,
                               out_dtype=jnp.bfloat16)
    y1 = y1.reshape(N, H1, W1, -1)

    # stage 2: relu( bn2(conv2(y1)) + bn_d(conv_d(x)) )
    # Both 3x3 stride-2 pad-1 convs accumulate inside ONE pallas_call via two
    # K segments sharing the accumulator (no HBM concat of patch matrices).
    a2, (N, Ho, Wo) = im2col_3x3(y1, stride=stride)
    ad, _ = im2col_3x3(x, stride=stride)
    y = fused_matmul_bias_act([(a2, w2), (ad, wd)], b2 + bd,
                              apply_relu=True, out_dtype=jnp.float32)
    y = y.reshape(N, Ho, Wo, -1)

    return jnp.transpose(y, (0, 3, 1, 2))             # NHWC -> NCHW


# ---------------------------------------------------------------------------
# Deterministic parameter construction (synthetic, no checkpoints)
# ---------------------------------------------------------------------------
def make_params(key, inplanes, planes):
    ks = jax.random.split(key, 12)

    def conv_w(k, cout, cin):
        return jax.random.normal(k, (cout, cin, 3, 3), jnp.float32) * 0.1

    def bn(kg, kb, km, c):
        gamma = 1.0 + 0.1 * jax.random.normal(kg, (c,), jnp.float32)
        beta = 0.1 * jax.random.normal(kb, (c,), jnp.float32)
        mean = 0.1 * jax.random.normal(km, (c,), jnp.float32)
        var = jnp.abs(0.5 + 0.1 * jax.random.normal(km, (c,), jnp.float32))
        return gamma, beta, mean, var

    return {
        "conv1_w": conv_w(ks[0], planes, inplanes),
        "bn1": bn(ks[1], ks[2], ks[3], planes),
        "conv2_w": conv_w(ks[4], planes, planes),
        "bn2": bn(ks[5], ks[6], ks[7], planes),
        "down_w": conv_w(ks[8], planes, inplanes),      # ConvBN default k=3, stride 2
        "bn_d": bn(ks[9], ks[10], ks[11], planes),
    }


if __name__ == "__main__":
    key = jax.random.PRNGKey(0)
    k_x, k_p = jax.random.split(key)

    batch, inplanes, planes, H, W = 2, 4, 8, 16, 16
    x = jax.random.normal(k_x, (batch, inplanes, H, W), jnp.float32)
    params = make_params(k_p, inplanes, planes)

    out = down_connection_forward(x, params, stride=2)
    out = jax.block_until_ready(out)

    assert out.shape == (batch, planes, H // 2, W // 2), out.shape
    assert bool(jnp.all(out >= 0.0))   # final ReLU
    print("KERNEL_OK")
</pallas_src>

<mosaic_0001>
module attributes {stable_mosaic.version = 11 : i64} {
  func.func @_fused_matmul_kernel(%arg0: i32, %arg1: i32, %arg2: i32, %arg3: memref<256x36xbf16, #tpu.memory_space<vmem>>, %arg4: memref<36x128xbf16, #tpu.memory_space<vmem>>, %arg5: memref<1x128xf32, #tpu.memory_space<vmem>>, %arg6: memref<256x128xbf16, #tpu.memory_space<vmem>>, %arg7: memref<256x128xf32, #tpu.memory_space<vmem>>) attributes {dimension_semantics = [#tpu.dimension_semantics<parallel>, #tpu.dimension_semantics<parallel>, #tpu.dimension_semantics<arbitrary>], iteration_bounds = array<i64: 2, 1, 1>, scalar_prefetch = 0 : i64, scratch_operands = 1 : i64, tpu.core_type = #tpu.core_type<tc>, window_params = [{transform_indices = @transform_0, window_bounds = array<i64: 256, 36>}, {transform_indices = @transform_1, window_bounds = array<i64: 36, 128>}, {transform_indices = @transform_2, window_bounds = array<i64: 1, 128>}, {transform_indices = @transform_3, window_bounds = array<i64: 256, 128>}]} {
    %c0_i32 = arith.constant 0 : i32
    %0 = arith.cmpi eq, %arg2, %c0_i32 : i32
    %1 = arith.extui %0 : i1 to i32
    %c0_i32_0 = arith.constant 0 : i32
    %2 = arith.cmpi ne, %1, %c0_i32_0 : i32
    scf.if %2 {
      %cst_10 = arith.constant 0.000000e+00 : f32
      %12 = vector.broadcast %cst_10 : f32 to vector<256x128xf32>
      %c0_11 = arith.constant 0 : index
      %c0_12 = arith.constant 0 : index
      %13 = vector.load %arg7[%c0_11, %c0_12] : memref<256x128xf32, #tpu.memory_space<vmem>>, vector<256x128xf32>
      tpu.vector_store %arg7[%c0_11, %c0_12], %12 {strides = array<i32>} : memref<256x128xf32, #tpu.memory_space<vmem>>, vector<256x128xf32>,
    } else {
    }
    %c0 = arith.constant 0 : index
    %c0_1 = arith.constant 0 : index
    %3 = vector.load %arg7[%c0, %c0_1] : memref<256x128xf32, #tpu.memory_space<vmem>>, vector<256x128xf32>
    %c0_2 = arith.constant 0 : index
    %c0_3 = arith.constant 0 : index
    %4 = vector.load %arg3[%c0_2, %c0_3] : memref<256x36xbf16, #tpu.memory_space<vmem>>, vector<256x36xbf16>
    %c0_4 = arith.constant 0 : index
    %c0_5 = arith.constant 0 : index
    %5 = vector.load %arg4[%c0_4, %c0_5] : memref<36x128xbf16, #tpu.memory_space<vmem>>, vector<36x128xbf16>
    %cst = arith.constant dense<0.000000e+00> : vector<256x128xf32>
    %6 = tpu.matmul %4, %5, %cst {dimension_numbers = #tpu.dot_dimension_numbers<[1], [0], [0], [1], [0, 0, 1, 1], [], []>} : vector<256x36xbf16>, vector<36x128xbf16>, vector<256x128xf32> -> vector<256x128xf32>
    %7 = arith.addf %3, %6 : vector<256x128xf32>
    %c0_6 = arith.constant 0 : index
    %c0_7 = arith.constant 0 : index
    %8 = vector.load %arg7[%c0_6, %c0_7] : memref<256x128xf32, #tpu.memory_space<vmem>>, vector<256x128xf32>
    tpu.vector_store %arg7[%c0_6, %c0_7], %7 {strides = array<i32>} : memref<256x128xf32, #tpu.memory_space<vmem>>, vector<256x128xf32>,
    %c0_i32_8 = arith.constant 0 : i32
    %9 = arith.cmpi eq, %arg2, %c0_i32_8 : i32
    %10 = arith.extui %9 : i1 to i32
    %c0_i32_9 = arith.constant 0 : i32
    %11 = arith.cmpi ne, %10, %c0_i32_9 : i32
    scf.if %11 {
      %c0_10 = arith.constant 0 : index
      %c0_11 = arith.constant 0 : index
      %12 = vector.load %arg7[%c0_10, %c0_11] : memref<256x128xf32, #tpu.memory_space<vmem>>, vector<256x128xf32>
      %c0_12 = arith.constant 0 : index
      %c0_13 = arith.constant 0 : index
      %13 = vector.load %arg5[%c0_12, %c0_13] : memref<1x128xf32, #tpu.memory_space<vmem>>, vector<1x128xf32>
      %14 = vector.broadcast %13 : vector<1x128xf32> to vector<256x128xf32>
      %15 = arith.addf %12, %14 : vector<256x128xf32>
      %cst_14 = arith.constant 0.000000e+00 : f32
      %16 = vector.broadcast %cst_14 : f32 to vector<256x128xf32>
      %17 = arith.maximumf %15, %16 : vector<256x128xf32>
      %18 = arith.truncf %17 : vector<256x128xf32> to vector<256x128xbf16>
      %c0_15 = arith.constant 0 : index
      %c0_16 = arith.constant 0 : index
      %19 = vector.load %arg6[%c0_15, %c0_16] : memref<256x128xbf16, #tpu.memory_space<vmem>>, vector<256x128xbf16>
      tpu.vector_store %arg6[%c0_15, %c0_16], %18 {strides = array<i32>} : memref<256x128xbf16, #tpu.memory_space<vmem>>, vector<256x128xbf16>,
    } else {
    }
    return
  }
  func.func @transform_0(%arg0: i32, %arg1: i32, %arg2: i32) -> (i32, i32) {
    %c0_i32 = arith.constant 0 : i32
    %0 = arith.subi %arg2, %c0_i32 : i32
    %c0_i32_0 = arith.constant 0 : i32
    %c0_i32_1 = arith.constant 0 : i32
    %1 = arith.maxsi %c0_i32_0, %0 : i32
    %2 = arith.minsi %c0_i32_1, %1 : i32
    %c0_i32_2 = arith.constant 0 : i32
    return %arg0, %2 : i32, i32
  }
  func.func @transform_1(%arg0: i32, %arg1: i32, %arg2: i32) -> (i32, i32) {
    %c0_i32 = arith.constant 0 : i32
    %0 = arith.subi %arg2, %c0_i32 : i32
    %c0_i32_0 = arith.constant 0 : i32
    %c0_i32_1 = arith.constant 0 : i32
    %1 = arith.maxsi %c0_i32_0, %0 : i32
    %2 = arith.minsi %c0_i32_1, %1 : i32
    %c0_i32_2 = arith.constant 0 : i32
    return %2, %arg1 : i32, i32
  }
  func.func @transform_2(%arg0: i32, %arg1: i32, %arg2: i32) -> (i32, i32) {
    %c0_i32 = arith.constant 0 : i32
    %c0_i32_0 = arith.constant 0 : i32
    return %c0_i32, %arg1 : i32, i32
  }
  func.func @transform_3(%arg0: i32, %arg1: i32, %arg2: i32) -> (i32, i32) {
    %c0_i32 = arith.constant 0 : i32
    return %arg0, %arg1 : i32, i32
  }
}

</mosaic_0001>

<bundles_post_ra>
// kernel: tpu_custom_call.1
= control target key start
LH: loop header
LB: loop body
LE: loop exit
PB: predicated region body
PF: predicated region fallthrough
CT: control target
= control target key end

     0   :  { %8 = vsyncpa [#allocation4], 0  ;;  %s1847_s0 = inlined_call_operand.vmem [shape: bf16[512,36], index: 0, kind: input, shape index: {}]   ;;  %s1848_s1 = inlined_call_operand.vmem [shape: bf16[36,128], index: 1, kind: input, shape index: {}]   ;;  %s1849_s2 = inlined_call_operand.vmem [shape: f32[1,128], index: 2, kind: input, shape index: {}]   ;;  %s1850_s3 = inlined_call_operand.hbm [shape: bf16[512,128], index: 3, kind: output, shape index: {}]  }
   0x1   :  { %10 = vsyncpa [#allocation4 + $0x1], 0  ;;  %s1630_s12 = smov 0   ;;  %s1632_s13 = smov 0  }
   0x2   :  { %s1634_s14 = smov 0   ;;  %s1636_s15 = smov 0  }
   0x3   :  { %s1638_s16 = smov 0   ;;  %s1640_s17 = smov 0  }
   0x4 LB: > { %s1175_s18 = sadd.s32 4294967295, %s1605_s17   ;;  %s1176_s19 = sadd.s32 4294967294, %s1605_s17   ;;  %s1605_s17 = sphi %s1640_s17, %s16_s17   ;;  %s1601_s16 = sphi %s1638_s16, %s1857_s16   ;;  %s1597_s15 = sphi %s1636_s15, %s1856_s15   ;;  %s1593_s14 = sphi %s1634_s14, %s1855_s14   ;;  %s1589_s13 = sphi %s1632_s13, %s1854_s13   ;;  %s1585_s12 = sphi %s1630_s12, %s1853_s12  }
   0x5   : > { %s35_s20 = sadd.s32 1, %s1601_s16  ;;  %s142_s21 = sadd.s32 1, %s1593_s14 }
   0x6   : > { %p37_p0 = scmp.ge.s32.totalorder %s35_s20, 2  ;;  %p152_p1 = scmp.ne.s32.totalorder %s1593_s14, %s1589_s13 }
   0x7   : > { %p153_p2 = scmp.eq.s32.totalorder %s1175_s18, 1  ;;  %p158_p3 = scmp.ne.s32.totalorder %s1589_s13, %s1585_s12 }
   0x8   : > { %s1859_s20 = smov (%p37_p0, %s35_s20), 0  ;;  %p159_p5 = scmp.eq.s32.totalorder %s1176_s19, 1 }
   0x9   : > { %p1670_p4 = por %p153_p2, %p152_p1  ;;  %s137_s23 = ssub.s32 %s1601_s16, %s1859_s20 }
   0xa   : > { %p1181_p6 = scmp.ge.s32.totalorder %s1605_s17, 1  ;;  %p140_p7 = scmp.eq.s32.totalorder %s137_s23, 0 }
   0xb   : > { %p1677_p8 = por %p159_p5, %p158_p3  ;;  %p223_p9 = scmp.lt.s32.totalorder %s1605_s17, 3 }
   0xc   : > { %s1683_s25 = scalar_select %p140_p7, %s1593_s14, %s142_s21  }
   0xd   : > { %p224_p10 = pnand %p1181_p6, %p223_p9 }
   0xe   : > { %v1508_v0 = vld [vmem:[%s1848_s1] sm:$0xff] (!%p224_p10)   ;;  %v1509_v1 = vld [vmem:[%s1848_s1 + $0x8] sm:$0xff] (!%p224_p10)   ;;  %s1183_s30 = sshll.u32 (!%p224_p10), %s1597_s15, 5  ;;  %v1510_v2 = vld [vmem:[%s1848_s1 + $0x10] ss:$0 sps:$4 sm:$0x33] (!%p224_p10)  }
   0xf   : > { %227 = sbr.rel (%p224_p10) target bundleno = 288 (0x120), region = 32  ;;  %1405 = vmatprep.subr.bf16.mxu0 (!%p224_p10), %v1508_v0  ;;  %1443 = vmatprep.subr.bf16.mxu1 (!%p224_p10), %v1508_v0  ;;  %p274_p11 = scmp.lt.s32.totalorder (!%p224_p10), %s1183_s30, 63  ;;  %vm557_vm0 = vcmask (!%p224_p10), 1041408   ;;  %vm508_vm1 = vcmask (!%p224_p10), 293888   ;;  %v1735_v20 = vld [vmem:[%s1849_s2] ss:$0 sm:$0xff] (!%p224_p10) }
  0x10   : > { %1406 = vmatpush3.bf16.msra.mxu0 (!%p224_p10), %v1508_v0  ;;  %1446 = vmatpush3.bf16.msra.mxu1 (!%p224_p10), %v1508_v0  ;;  %v559_v3 = vsel (!%p224_p10), %vm557_vm0, %v1510_v2, 0  ;;  %s266_s18 = sand.u32 (!%p224_p10), 1, %s1589_s13   ;;  %s1290_s23 = sshll.u32 (!%p224_p10), %s1597_s15, 11 }
  0x11   : > { %1407 = vmatprep.subr.bf16.mxu0 (!%p224_p10), %v1509_v1  ;;  %1444 = vmatprep.subr.bf16.mxu1 (!%p224_p10), %v1509_v1  ;;  %s1182_s19 = sshll.u32 (!%p224_p10), %s266_s18, 7  ;;  %s1791_s15 = scalar_lea.hbm (!%p224_p10), %s1850_s3, %s1290_s23 }
  0x12   : > { %s1748_s21 = scalar_lea.vmem (!%p224_p10), [#allocation3], %s1182_s19  ;;  %s1801_s29 = scalar_lea.sflag (!%p224_p10), [#allocation4], %s266_s18 }
  0x13   : > { %s1067_s26 = sshll.u32 (!%p224_p10), %s1748_s21, 4  ;;  %s1607_s4 = smov (!%p224_p10), [#allocation3]   ;;  %s1793_s26 = int_to_ptr.vmem [resolvable:$true] %s1067_s26 }
  0x14   : > { %1408 = vmatpush3.bf16.msra.mxu0 (!%p224_p10), %v1509_v1  ;;  %1447 = vmatpush3.bf16.msra.mxu1 (!%p224_p10), %v1509_v1  ;;  %s1531_s5 = sshll.u32 (!%p224_p10), %s1607_s4, 4  ;;  %s1532_s5 = int_to_ptr.vmem [resolvable:$false] %s1531_s5 }
  0x15   : > { %1449 = vmatprep.subr.msk.bf16.mxu0 (!%p224_p10), %vm557_vm0, %v1510_v2  ;;  %1450 = vmatprep.subr.msk.bf16.mxu1 (!%p224_p10), %vm557_vm0, %v1510_v2  ;;  %p1534_p1 = scmp.lt.s32.totalorder (!%p224_p10), %s1793_s26, %s1532_s5 }
  0x16   : > { %s1861_s30 = smov (!%p274_p11, %s1183_s30), 63 }
  0x17   : > { %s1184_s6 = sshll.u32 %s1861_s30, 2  ;;  %s1527_s30 = scalar_lea.vmem %s1793_s26, 2048 }
  0x18   : > { %s1698_s9 = scalar_lea.vmem %s1847_s0, %s1184_s6  ;;  %1410 = vmatpush3.bf16.msra.mxu0 %v559_v3  ;;  %1448 = vmatpush3.bf16.msra.mxu1 %v559_v3  ;;  %p1528_p12 = scmp.ne.s32.totalorder %s1793_s26, %s1527_s30 }
  0x19   : > { %v1511_v4 = vld [vmem:[%s1698_s9] sm:$0xff]   ;;  %v1513_v6 = vld [vmem:[%s1698_s9 + $0x8] sm:$0xff]   ;;  %v1515_v8 = vld [vmem:[%s1698_s9 + $0x10] sm:$0xff]   ;;  %s1533_s6 = scalar_lea.vmem %s1532_s5, 4096 }
  0x1a   : > { %v1512_v5 = vld [vmem:[%s1698_s9 + $0x40] sm:$0xff]   ;;  %1411 = vmatprep.mubr.msk.bf16.mxu0 %vm508_vm1, %v1511_v4  ;;  %v1514_v7 = vld [vmem:[%s1698_s9 + $0x48] sm:$0xff]   ;;  %v1516_v9 = vld [vmem:[%s1698_s9 + $0x50] sm:$0xff]   ;;  %p1529_p13 = pnand %p1528_p12, %p1670_p4  ;;  %p1535_p2 = scmp.lt.s32.totalorder %s1533_s6, %s1527_s30 }
  0x1b   : > { %1427 = vmatprep.mubr.msk.bf16.mxu1 %vm508_vm1, %v1512_v5  ;;  %1412 = vmatmul.mubr.msk.bf16.vlgmr.msra.gmra.mrb[0].mxu0 %vm508_vm1, %v1513_v6  ;;  %v1517_v10 = vld [vmem:[%s1698_s9 + $0x18] sm:$0xff]   ;;  %v1519_v12 = vld [vmem:[%s1698_s9 + $0x20] sm:$0xff]   ;;  %v1521_v14 = vld [vmem:[%s1698_s9 + $0x28] sm:$0xff]  }
  0x1c   : > { %1428 = vmatmul.mubr.msk.bf16.vlgmr.msra.gmra.mrb[0].mxu1 %vm508_vm1, %v1514_v7  ;;  %1415 = vmatprep.mubr.msk.bf16.mxu0 %vm508_vm1, %v1515_v8  ;;  %v1518_v11 = vld [vmem:[%s1698_s9 + $0x58] sm:$0xff]   ;;  %v1520_v13 = vld [vmem:[%s1698_s9 + $0x60] sm:$0xff]   ;;  %v1522_v15 = vld [vmem:[%s1698_s9 + $0x68] sm:$0xff]   ;;  %p1530_p0 = pneg %p1529_p13  ;;  %p1536_p3 = por %p1535_p2, %p1534_p1 }
  0x1d   : > { %1431 = vmatprep.mubr.msk.bf16.mxu1 %vm508_vm1, %v1516_v9  ;;  %v1523_v16 = vld [vmem:[%s1698_s9 + $0x30] sm:$0xff]   ;;  %v1525_v18 = vld [vmem:[%s1698_s9 + $0x38] sm:$0xff]  }
  0x1e   : > { %v1524_v17 = vld [vmem:[%s1698_s9 + $0x70] sm:$0xff]   ;;  %v1526_v19 = vld [vmem:[%s1698_s9 + $0x78] sm:$0xff]   ;;  %p1537_p5 = pnand %p1536_p3, %p1530_p0 }
  0x23   : > { %1416 = vmatmul.mubr.msk.bf16.gmra.mrb[4].mxu0 %vm508_vm1, %v1517_v10 }
  0x24   : > { %1432 = vmatmul.mubr.msk.bf16.gmra.mrb[4].mxu1 %vm508_vm1, %v1518_v11  ;;  %1419 = vmatprep.mubr.msk.bf16.mxu0 %vm508_vm1, %v1519_v12 }
  0x25   : > { %1435 = vmatprep.mubr.msk.bf16.mxu1 %vm508_vm1, %v1520_v13 }
  0x2b   : > { %1420 = vmatmul.mubr.msk.bf16.gmra.mrb[8].mxu0 %vm508_vm1, %v1521_v14 }
  0x2c   : > { %1436 = vmatmul.mubr.msk.bf16.gmra.mrb[8].mxu1 %vm508_vm1, %v1522_v15  ;;  %1423 = vmatprep.mubr.msk.bf16.mxu0 %vm508_vm1, %v1523_v16 }
  0x2d   : > { %1439 = vmatprep.mubr.msk.bf16.mxu1 %vm508_vm1, %v1524_v17 }
  0x33   : > { %1424 = vmatmul.mubr.msk.bf16.gmra.mrb[12].mxu0 %vm508_vm1, %v1525_v18 }
  0x34   : > { %1440 = vmatmul.mubr.msk.bf16.gmra.mrb[12].mxu1 %vm508_vm1, %v1526_v19 }
  0xee   : > { %v1413_v21 = vpop.f32.mrb[0].mxu0 }
  0xef   : > { %v1429_v22 = vpop.f32.mrb[0].mxu1  ;;  %v830_v23 = vadd.f32 %v1413_v21, %v1735_v20  ;;  %v595_v25 = vpop.f32.mrb[1].mxu0 }
  0xf0   : > { %v846_v24 = vadd.f32 %v1429_v22, %v1735_v20  ;;  %v659_v26 = vpop.f32.mrb[1].mxu1  ;;  %v828_v27 = vadd.f32 %v1735_v20, %v595_v25  ;;  %v1414_v29 = vpop.f32.mrb[2].mxu0 }
  0xf1   : > { %v844_v28 = vadd.f32 %v1735_v20, %v659_v26  ;;  %v1430_v30 = vpop.f32.mrb[2].mxu1  ;;  %v831_v31 = vadd.f32 %v1414_v29, %v1735_v20  ;;  %v598_v33 = vpop.f32.mrb[3].mxu0  ;;  %v862_v37 = vmax.f32 %v830_v23, 0.0 }
  0xf2   : > { %v847_v32 = vadd.f32 %v1430_v30, %v1735_v20  ;;  %v662_v34 = vpop.f32.mrb[3].mxu1  ;;  %v829_v35 = vadd.f32 %v1735_v20, %v598_v33  ;;  %v878_v38 = vmax.f32 %v846_v24, 0.0  ;;  %v860_v41 = vmax.f32 %v828_v27, 0.0 }
  0xf3   : > { %v845_v36 = vadd.f32 %v1735_v20, %v662_v34  ;;  %v863_v39 = vmax.f32 %v831_v31, 0.0  ;;  %v876_v42 = vmax.f32 %v844_v28, 0.0 }
  0xf4   : > { %v879_v40 = vmax.f32 %v847_v32, 0.0  ;;  %v861_v43 = vmax.f32 %v829_v35, 0.0 }
  0xf5   : > { %v877_v44 = vmax.f32 %v845_v36, 0.0  ;;  %v1299_v45 = vpack.c.bf16 %v863_v39, %v862_v37 }
  0xf6   : > { %v1339_v46 = vpack.c.bf16 %v879_v40, %v878_v38  ;;  %v1294_v47 = vpack.c.bf16 %v861_v43, %v860_v41  ;;  %v1417_v49 = vpop.f32.mrb[4].mxu0 }
  0xf7   : > { %v1334_v48 = vpack.c.bf16 %v877_v44, %v876_v42  ;;  %v1433_v50 = vpop.f32.mrb[4].mxu1  ;;  %1371 = vst [vmem:[%s1748_s21 + $0x8] sm:$0xff] %v1299_v45   ;;  %v834_v51 = vadd.f32 %v1417_v49, %v1735_v20  ;;  %v611_v53 = vpop.f32.mrb[5].mxu0 }
  0xf8   : > { %1379 = vst [vmem:[%s1748_s21 + $0x48] sm:$0xff] %v1339_v46   ;;  %v850_v52 = vadd.f32 %v1433_v50, %v1735_v20  ;;  %v675_v54 = vpop.f32.mrb[5].mxu1  ;;  %1295 = vst [vmem:[%s1748_s21] sm:$0xff] %v1294_v47   ;;  %v832_v55 = vadd.f32 %v1735_v20, %v611_v53  ;;  %v1418_v57 = vpop.f32.mrb[6].mxu0 }
  0xf9   : > { %1378 = vst [vmem:[%s1748_s21 + $0x40] sm:$0xff] %v1334_v48   ;;  %v848_v56 = vadd.f32 %v1735_v20, %v675_v54  ;;  %v1434_v58 = vpop.f32.mrb[6].mxu1  ;;  %v835_v59 = vadd.f32 %v1418_v57, %v1735_v20  ;;  %v614_v61 = vpop.f32.mrb[7].mxu0  ;;  %v866_v1 = vmax.f32 %v834_v51, 0.0 }
  0xfa   : > { %v851_v60 = vadd.f32 %v1434_v58, %v1735_v20  ;;  %v678_v62 = vpop.f32.mrb[7].mxu1  ;;  %v833_v63 = vadd.f32 %v1735_v20, %v614_v61  ;;  %v882_v2 = vmax.f32 %v850_v52, 0.0  ;;  %v864_v5 = vmax.f32 %v832_v55, 0.0 }
  0xfb   : > { %v849_v0 = vadd.f32 %v1735_v20, %v678_v62  ;;  %v867_v3 = vmax.f32 %v835_v59, 0.0  ;;  %v880_v6 = vmax.f32 %v848_v56, 0.0 }
  0xfc   : > { %v883_v4 = vmax.f32 %v851_v60, 0.0  ;;  %v865_v7 = vmax.f32 %v833_v63, 0.0 }
  0xfd   : > { %v881_v8 = vmax.f32 %v849_v0, 0.0  ;;  %v1309_v9 = vpack.c.bf16 %v867_v3, %v866_v1 }
  0xfe   : > { %v1349_v10 = vpack.c.bf16 %v883_v4, %v882_v2  ;;  %v1304_v11 = vpack.c.bf16 %v865_v7, %v864_v5  ;;  %v1421_v13 = vpop.f32.mrb[8].mxu0 }
  0xff   : > { %v1344_v12 = vpack.c.bf16 %v881_v8, %v880_v6  ;;  %v1437_v14 = vpop.f32.mrb[8].mxu1  ;;  %1373 = vst [vmem:[%s1748_s21 + $0x18] sm:$0xff] %v1309_v9   ;;  %v838_v15 = vadd.f32 %v1421_v13, %v1735_v20  ;;  %v627_v17 = vpop.f32.mrb[9].mxu0 }
 0x100   : > { %1381 = vst [vmem:[%s1748_s21 + $0x58] sm:$0xff] %v1349_v10   ;;  %v854_v16 = vadd.f32 %v1437_v14, %v1735_v20  ;;  %v691_v18 = vpop.f32.mrb[9].mxu1  ;;  %1372 = vst [vmem:[%s1748_s21 + $0x10] sm:$0xff] %v1304_v11   ;;  %v836_v19 = vadd.f32 %v1735_v20, %v627_v17  ;;  %v1422_v22 = vpop.f32.mrb[10].mxu0 }
 0x101   : > { %1380 = vst [vmem:[%s1748_s21 + $0x50] sm:$0xff] %v1344_v12   ;;  %v852_v21 = vadd.f32 %v1735_v20, %v691_v18  ;;  %v1438_v23 = vpop.f32.mrb[10].mxu1  ;;  %v839_v24 = vadd.f32 %v1422_v22, %v1735_v20  ;;  %v630_v26 = vpop.f32.mrb[11].mxu0  ;;  %v870_v30 = vmax.f32 %v838_v15, 0.0 }
 0x102   : > { %v855_v25 = vadd.f32 %v1438_v23, %v1735_v20  ;;  %v694_v27 = vpop.f32.mrb[11].mxu1  ;;  %v837_v28 = vadd.f32 %v1735_v20, %v630_v26  ;;  %v886_v31 = vmax.f32 %v854_v16, 0.0  ;;  %v868_v34 = vmax.f32 %v836_v19, 0.0 }
 0x103   : > { %v853_v29 = vadd.f32 %v1735_v20, %v694_v27  ;;  %v871_v32 = vmax.f32 %v839_v24, 0.0  ;;  %v884_v35 = vmax.f32 %v852_v21, 0.0 }
 0x104   : > { %v887_v33 = vmax.f32 %v855_v25, 0.0  ;;  %v869_v36 = vmax.f32 %v837_v28, 0.0 }
 0x105   : > { %v885_v37 = vmax.f32 %v853_v29, 0.0  ;;  %v1319_v38 = vpack.c.bf16 %v871_v32, %v870_v30 }
 0x106   : > { %v1359_v39 = vpack.c.bf16 %v887_v33, %v886_v31  ;;  %v1314_v40 = vpack.c.bf16 %v869_v36, %v868_v34  ;;  %v1425_v42 = vpop.f32.mrb[12].mxu0 }
 0x107   : > { %v1354_v41 = vpack.c.bf16 %v885_v37, %v884_v35  ;;  %v1441_v43 = vpop.f32.mrb[12].mxu1  ;;  %1375 = vst [vmem:[%s1748_s21 + $0x28] sm:$0xff] %v1319_v38   ;;  %v842_v44 = vadd.f32 %v1425_v42, %v1735_v20  ;;  %v643_v46 = vpop.f32.mrb[13].mxu0 }
 0x108   : > { %1383 = vst [vmem:[%s1748_s21 + $0x68] sm:$0xff] %v1359_v39   ;;  %v858_v45 = vadd.f32 %v1441_v43, %v1735_v20  ;;  %v707_v47 = vpop.f32.mrb[13].mxu1  ;;  %1374 = vst [vmem:[%s1748_s21 + $0x20] sm:$0xff] %v1314_v40   ;;  %v840_v48 = vadd.f32 %v1735_v20, %v643_v46  ;;  %v1426_v50 = vpop.f32.mrb[14].mxu0 }
 0x109   : > { %1382 = vst [vmem:[%s1748_s21 + $0x60] sm:$0xff] %v1354_v41   ;;  %v856_v49 = vadd.f32 %v1735_v20, %v707_v47  ;;  %v1442_v51 = vpop.f32.mrb[14].mxu1  ;;  %v843_v52 = vadd.f32 %v1426_v50, %v1735_v20  ;;  %v646_v54 = vpop.f32.mrb[15].mxu0  ;;  %v874_v58 = vmax.f32 %v842_v44, 0.0 }
 0x10a   : > { %v859_v53 = vadd.f32 %v1442_v51, %v1735_v20  ;;  %v710_v55 = vpop.f32.mrb[15].mxu1  ;;  %v841_v56 = vadd.f32 %v1735_v20, %v646_v54  ;;  %v890_v59 = vmax.f32 %v858_v45, 0.0  ;;  %v872_v62 = vmax.f32 %v840_v48, 0.0 }
 0x10b   : > { %v857_v57 = vadd.f32 %v1735_v20, %v710_v55  ;;  %v875_v60 = vmax.f32 %v843_v52, 0.0  ;;  %v888_v63 = vmax.f32 %v856_v49, 0.0 }
 0x10c   : > { %v891_v61 = vmax.f32 %v859_v53, 0.0  ;;  %v873_v0 = vmax.f32 %v841_v56, 0.0 }
 0x10d   : > { %v889_v1 = vmax.f32 %v857_v57, 0.0  ;;  %v1329_v2 = vpack.c.bf16 %v875_v60, %v874_v58 }
 0x10e   : > { %v1369_v3 = vpack.c.bf16 %v891_v61, %v890_v59  ;;  %v1324_v20 = vpack.c.bf16 %v873_v0, %v872_v62 }
 0x10f   : > { %v1364_v4 = vpack.c.bf16 %v889_v1, %v888_v63  ;;  %1377 = vst [vmem:[%s1748_s21 + $0x38] sm:$0xff] %v1329_v2  }
 0x110   : > { %1385 = vst [vmem:[%s1748_s21 + $0x78] sm:$0xff] %v1369_v3   ;;  %1376 = vst [vmem:[%s1748_s21 + $0x30] sm:$0xff] %v1324_v20  }
 0x111   : > { %1384 = vst [vmem:[%s1748_s21 + $0x70] sm:$0xff] %v1364_v4  }
 0x112   : > { %1540 = shalt.err (!%p1537_p5)
}
 0x113   : > { %s1541_s7 = scalar_lea.hbm %s1791_s15, 2048  ;;  %s1545_s10 = scalar_lea.hbm %s1850_s3, 4096 }
 0x114   : > { %p1542_p6 = scmp.ne.s32.totalorder %s1791_s15, %s1541_s7  ;;  %p1546_p10 = scmp.lt.u32.totalorder %s1791_s15, %s1850_s3 }
 0x115   : > { %p1547_p11 = scmp.lt.u32.totalorder %s1545_s10, %s1541_s7  ;;  %p1549_p13 = scmp.lt.u32.totalorder %s1541_s7, %s1791_s15 }
 0x116   : > { %p1543_p7 = pnand %p1542_p6, %p1670_p4 }
 0x117   : > { %p1548_p12 = por %p1547_p11, %p1546_p10 }
 0x118   : > { %p1544_p9 = pneg %p1543_p7 }
 0x119   : > { %p1550_p0 = por %p1549_p13, %p1548_p12 }
 0x11b   : > { %p1551_p1 = pnand %p1550_p0, %p1544_p9 }
 0x11d   : > { %1554 = shalt.err (!%p1551_p1)
}
 0x11e   : > { %s1608_s19 = smov 64   ;;  %s1609_s21 = smov 4  }
 0x11f   : > { %1451 = dma.vmem_to_hbm [thread:$0]  (%p1670_p4), %s1793_s26, 2048, %s1791_s15, %s1801_s29, %s1608_s19, %s1608_s19, %s1609_s21  }
 0x120 PF: > { %p1457_p2 = scmp.ge.s32.totalorder %s1605_s17, 2  ;;  %s1082_s23 = sand.u32 1, %s1585_s12  }
 0x121   : > { %s1083_s27 = scalar_lea.sflag [#allocation4], %s1082_s23 }
 0x122   : > { %p1454_p3 = pnand %p1457_p2, %p1677_p8 }
 0x124   : > { %1580 = dma.done.wait (!%p1454_p3), %s1083_s27, 2048  }
 0x125   : > { %1582 = vsyncadd (!%p1454_p3), %s1083_s27, 4294965248  ;;  %s16_s17 = sadd.s32 1, %s1605_s17   ;;  %s1853_s12 = smov %s1589_s13 }
 0x126   : > { %p13_p5 = scmp.ge.s32.totalorder %s16_s17, 4   ;;  %s1854_s13 = smov %s1593_s14 }
 0x127   : > { %s1855_s14 = smov %s1683_s25  ;;  %s1856_s15 = smov %s1601_s16 }
 0x128   : > { %s1857_s16 = smov %s1859_s20  ;;  %15 = sbr.rel (!%p13_p5) target bundleno = 4 (0x4), region = 81 }
 0x12f   :  { %1088 = vsyncpa [#allocation4], 1 }
 0x130   :  { %1090 = vsyncpa [#allocation4 + $0x1], 1 }

</bundles_post_ra>
